<compile_context>
chip_gen: v5e
topology: v5e:2x2
jax: 0.10.0
libtpu: 0.0.40
codegen_flags: <defaults>
</compile_context>

<pallas_src>
import functools

import jax
import jax.numpy as jnp
from jax.experimental import pallas as pl
from jax.experimental.pallas import tpu as pltpu


_LANE = 128          # lane width (last-dim alignment)
_BATCH_ALIGN = 16    # bf16 sublane packing granularity for the batch dim
_STAGE_BYTES = 64 * 1024   # stage activations > ~1/4 of the 256 KiB vreg file


def _round_up(x, m):
    return ((x + m - 1) // m) * m


def _choose_batch_tiling(batch):
    """Pick (padded_batch, batch_tile).

    * batch padded only to the bf16 sublane granularity (16), never to 128
      (the MXU M dimension only needs sublane alignment).
    * tiles capped at 256 rows (fills the 2x256x256 MXU on v6e/v7x).
    * guarantee >=2 grid steps when the batch permits, so the "parallel"
      axis can occupy both v7x TensorCores.
    """
    b_pad = _round_up(max(int(batch), 1), _BATCH_ALIGN)
    bm = min(256, b_pad)
    b_pad = _round_up(b_pad, bm)
    if b_pad // bm < 2 and b_pad >= 2 * _BATCH_ALIGN:
        bm = _round_up((b_pad + 1) // 2, _BATCH_ALIGN)
        b_pad = 2 * bm
    return b_pad, bm


def _fused_ffn_kernel(*refs, num_layers, stage_flags, stage_widths):
    """Fused masked-FFN forward for one batch tile.

    refs = (x_ref, w0_ref, b0_ref, ..., w{L-1}_ref, b{L-1}_ref, o_ref[, h_scr])

    Weights are pre-masked, pre-transposed to (in, out), zero-padded bf16.
    Each layer is `h @ w` on the MXU with f32 accumulation, + f32 bias,
    optional ReLU; the last layer has no activation. Wide inter-layer
    activations ping-pong through a VMEM scratch; small ones stay in vregs.
    """
    have_scratch = any(stage_flags)
    if have_scratch:
        core, h_scr = refs[:-1], refs[-1]
    else:
        core = refs
    x_ref = core[0]
    o_ref = core[-1]
    layer_refs = core[1:-1]

    h = x_ref[...]                                  # bf16 activation tile
    slot = 0
    for i in range(num_layers):
        w = layer_refs[2 * i][...]                  # bf16 (in, out)
        b = layer_refs[2 * i + 1][...]              # f32  (1, out)
        acc = jnp.dot(h, w, preferred_element_type=jnp.float32) + b
        if i == num_layers - 1:
            o_ref[...] = acc.astype(o_ref.dtype)    # layer_out: no activation
        else:
            act = jnp.maximum(acc, 0.0).astype(jnp.bfloat16)
            if stage_flags[i]:
                nw = stage_widths[i]
                h_scr[slot, :, :nw] = act           # bound live range in VMEM
                h = h_scr[slot, :, :nw]
                slot ^= 1
            else:
                h = act


def init_masked_deep_ffn_params(key, input_size, num_classes, hidden_layers):
    """Deterministic init mimicking nn.Linear's uniform init.

    Returns list of (weight, mask, bias) with PyTorch layouts:
    weight (out, in), mask (out, in) bool (all ones, as registered in
    MaskedLinearLayer.__init__), bias (out,).
    """
    dims = [input_size] + list(hidden_layers) + [num_classes]
    params = []
    for i in range(len(dims) - 1):
        in_f, out_f = dims[i], dims[i + 1]
        key, kw, kb = jax.random.split(key, 3)
        bound = 1.0 / (in_f ** 0.5)
        w = jax.random.uniform(kw, (out_f, in_f), jnp.float32, -bound, bound)
        b = jax.random.uniform(kb, (out_f,), jnp.float32, -bound, bound)
        mask = jnp.ones((out_f, in_f), dtype=jnp.bool_)
        params.append((w, mask, b))
    return params


def prepare_masked_ffn_params(params, weight_dtype=jnp.bfloat16):
    """One-time fold done at parameter-update time (NOT per forward):

      * fold the boolean mask into the weight,
      * transpose to (in, out) so the kernel needs no .T,
      * zero-pad every feature dim to a multiple of 128 (lane-aligned),
      * cast the masked weight to bf16 (MXU fast path, half the DMA);
        the bias stays f32 (added after the f32 accumulation).

    Zero padding is semantics-preserving: padded input columns, weight
    rows/cols and bias entries are all zero, so padded activations stay
    exactly zero through every layer (including ReLU).
    """
    prepared = []
    for w, mask, b in params:
        wm = (w * mask.astype(w.dtype)).T.astype(jnp.float32)   # (in, out)
        k, n = wm.shape
        kp, npad = _round_up(k, _LANE), _round_up(n, _LANE)
        wp = jnp.zeros((kp, npad), jnp.float32).at[:k, :n].set(wm)
        wp = wp.astype(weight_dtype)
        bp = jnp.zeros((1, npad), jnp.float32).at[0, :n].set(b.astype(jnp.float32))
        prepared.append((wp, bp))
    return prepared


def masked_deep_ffn_forward(x_nchw, prepared_params, num_classes):
    """Full MaskedDeepFFN forward: flatten + fused masked linears with ReLU."""
    B = x_nchw.shape[0]
    x = x_nchw.reshape(B, -1).astype(jnp.float32)   # flatten(start_dim=1).float()
    in_features = x.shape[1]

    num_layers = len(prepared_params)
    k_pad = prepared_params[0][0].shape[0]          # padded input width
    n_out_pad = prepared_params[-1][0].shape[1]     # padded output width

    b_pad, bm = _choose_batch_tiling(B)
    grid = (b_pad // bm,)

    # Zero-pad the batch / input width, then cast to bf16 (half the x DMA).
    xp = jnp.zeros((b_pad, k_pad), jnp.float32).at[:B, :in_features].set(x)
    xp = xp.astype(jnp.bfloat16)

    # Decide which inter-layer activations get staged through VMEM scratch.
    inter_widths = [wp.shape[1] for wp, _ in prepared_params[:-1]]
    stage_flags = [bm * w * 2 > _STAGE_BYTES for w in inter_widths]
    max_staged = max((w for w, f in zip(inter_widths, stage_flags) if f),
                     default=0)

    flat_params = []
    in_specs = [pl.BlockSpec((bm, k_pad), lambda i: (i, 0),
                             memory_space=pltpu.MemorySpace.VMEM)]
    for wp, bp in prepared_params:
        flat_params += [wp, bp]
        # Grid-invariant weights/biases: single-buffered (no wasted 2x VMEM).
        in_specs.append(pl.BlockSpec(wp.shape, lambda i: (0, 0),
                                     memory_space=pltpu.MemorySpace.VMEM,
                                     pipeline_mode=pl.Buffered(1)))
        in_specs.append(pl.BlockSpec(bp.shape, lambda i: (0, 0),
                                     memory_space=pltpu.MemorySpace.VMEM,
                                     pipeline_mode=pl.Buffered(1)))

    scratch_shapes = []
    if max_staged > 0:
        scratch_shapes.append(pltpu.VMEM((2, bm, max_staged), jnp.bfloat16))

    # Explicit VMEM budget: single-buffered weights/biases + double-buffered
    # x/out tiles + activation scratch, with headroom.
    weight_bytes = sum(int(w.size) * w.dtype.itemsize +
                       int(b.size) * b.dtype.itemsize
                       for w, b in prepared_params)
    io_bytes = 2 * bm * k_pad * 2 + 2 * bm * n_out_pad * 4
    scratch_bytes = 2 * bm * max_staged * 2
    vmem_limit = int(1.5 * (weight_bytes + io_bytes + scratch_bytes)) + (4 << 20)
    vmem_limit = min(max(vmem_limit, 32 << 20), 100 << 20)
    # TODO(synk): if weight_bytes alone approaches the per-generation VMEM
    # budget (e.g. >~48 MiB on v7x's 64 MiB VMEM), switch the oversized layers
    # to a weight-streaming path (memory_space=pl.ANY + pltpu.emit_pipeline
    # tiling over the layer's N dimension) instead of full residency.

    out_padded = pl.pallas_call(
        functools.partial(_fused_ffn_kernel, num_layers=num_layers,
                          stage_flags=stage_flags, stage_widths=inter_widths),
        out_shape=jax.ShapeDtypeStruct((b_pad, n_out_pad), jnp.float32),
        grid=grid,
        in_specs=in_specs,
        out_specs=pl.BlockSpec((bm, n_out_pad), lambda i: (i, 0),
                               memory_space=pltpu.MemorySpace.VMEM),
        scratch_shapes=scratch_shapes,
        compiler_params=pltpu.CompilerParams(
            dimension_semantics=("parallel",),
            vmem_limit_bytes=vmem_limit),
    )(xp, *flat_params)

    return out_padded[:B, :num_classes]


if __name__ == "__main__":
    key = jax.random.PRNGKey(0)
    k_in, k_param = jax.random.split(key)

    # Small shapes consistent with the module: image-like NCHW input.
    B, C, H, W = 2, 4, 16, 16
    input_size = C * H * W          # np.prod of the tuple, as in __init__
    hidden_layers = [32, 32]
    num_classes = 10

    x = jax.random.normal(k_in, (B, C, H, W), dtype=jnp.float32)
    params = init_masked_deep_ffn_params(k_param, input_size, num_classes,
                                         hidden_layers)
    prepared = prepare_masked_ffn_params(params)   # one-time mask fold + pad

    fwd = jax.jit(functools.partial(masked_deep_ffn_forward,
                                    num_classes=num_classes))
    out = fwd(x, prepared)
    jax.block_until_ready(out)
    assert out.shape == (B, num_classes)

    # Matched-precision reference (same bf16 weight/activation rounding, f32
    # accumulation) — should track the kernel tightly.
    ref_bf16 = x.reshape(B, -1).astype(jnp.float32)
    for i, (w, m, b) in enumerate(params):
        wm = (w * m.astype(w.dtype)).T.astype(jnp.bfloat16)
        ref_bf16 = jnp.dot(ref_bf16.astype(jnp.bfloat16), wm,
                           preferred_element_type=jnp.float32) + b
        if i < len(params) - 1:
            ref_bf16 = jnp.maximum(ref_bf16, 0.0)
    assert jnp.allclose(out, ref_bf16, atol=1e-2, rtol=1e-2)

    # Full-f32 reference of the PyTorch math (looser tol: bf16 weight rounding).
    ref_f32 = x.reshape(B, -1).astype(jnp.float32)
    for i, (w, m, b) in enumerate(params):
        ref_f32 = ref_f32 @ (w * m.astype(w.dtype)).T + b
        if i < len(params) - 1:
            ref_f32 = jnp.maximum(ref_f32, 0.0)
    assert jnp.allclose(out, ref_f32, atol=5e-2, rtol=5e-2)

    print("KERNEL_OK")
</pallas_src>

<mosaic_0001>
module attributes {stable_mosaic.version = 11 : i64} {
  func.func @_fused_ffn_kernel(%arg0: i32, %arg1: memref<16x1024xbf16, #tpu.memory_space<vmem>>, %arg2: memref<1024x128xbf16, #tpu.memory_space<vmem>>, %arg3: memref<1x128xf32, #tpu.memory_space<vmem>>, %arg4: memref<128x128xbf16, #tpu.memory_space<vmem>>, %arg5: memref<1x128xf32, #tpu.memory_space<vmem>>, %arg6: memref<128x128xbf16, #tpu.memory_space<vmem>>, %arg7: memref<1x128xf32, #tpu.memory_space<vmem>>, %arg8: memref<16x128xf32, #tpu.memory_space<vmem>>) attributes {dimension_semantics = [#tpu.dimension_semantics<parallel>], iteration_bounds = array<i64: 1>, scalar_prefetch = 0 : i64, scratch_operands = 0 : i64, tpu.core_type = #tpu.core_type<tc>, window_params = [{transform_indices = @transform_0, window_bounds = array<i64: 16, 1024>}, {pipeline_mode = #tpu.pipeline_mode<synchronous>, transform_indices = @transform_1, window_bounds = array<i64: 1024, 128>}, {pipeline_mode = #tpu.pipeline_mode<synchronous>, transform_indices = @transform_2, window_bounds = array<i64: 1, 128>}, {pipeline_mode = #tpu.pipeline_mode<synchronous>, transform_indices = @transform_3, window_bounds = array<i64: 128, 128>}, {pipeline_mode = #tpu.pipeline_mode<synchronous>, transform_indices = @transform_4, window_bounds = array<i64: 1, 128>}, {pipeline_mode = #tpu.pipeline_mode<synchronous>, transform_indices = @transform_5, window_bounds = array<i64: 128, 128>}, {pipeline_mode = #tpu.pipeline_mode<synchronous>, transform_indices = @transform_6, window_bounds = array<i64: 1, 128>}, {transform_indices = @transform_7, window_bounds = array<i64: 16, 128>}]} {
    %c0 = arith.constant 0 : index
    %c0_0 = arith.constant 0 : index
    %0 = vector.load %arg1[%c0, %c0_0] : memref<16x1024xbf16, #tpu.memory_space<vmem>>, vector<16x1024xbf16>
    %c0_1 = arith.constant 0 : index
    %c0_2 = arith.constant 0 : index
    %1 = vector.load %arg2[%c0_1, %c0_2] : memref<1024x128xbf16, #tpu.memory_space<vmem>>, vector<1024x128xbf16>
    %c0_3 = arith.constant 0 : index
    %c0_4 = arith.constant 0 : index
    %2 = vector.load %arg3[%c0_3, %c0_4] : memref<1x128xf32, #tpu.memory_space<vmem>>, vector<1x128xf32>
    %cst = arith.constant dense<0.000000e+00> : vector<16x128xf32>
    %3 = tpu.matmul %0, %1, %cst {dimension_numbers = #tpu.dot_dimension_numbers<[1], [0], [0], [1], [0, 0, 1, 1], [], []>} : vector<16x1024xbf16>, vector<1024x128xbf16>, vector<16x128xf32> -> vector<16x128xf32>
    %4 = vector.broadcast %2 : vector<1x128xf32> to vector<16x128xf32>
    %5 = arith.addf %3, %4 : vector<16x128xf32>
    %cst_5 = arith.constant 0.000000e+00 : f32
    %6 = vector.broadcast %cst_5 : f32 to vector<16x128xf32>
    %7 = arith.maximumf %5, %6 : vector<16x128xf32>
    %8 = arith.truncf %7 : vector<16x128xf32> to vector<16x128xbf16>
    %c0_6 = arith.constant 0 : index
    %c0_7 = arith.constant 0 : index
    %9 = vector.load %arg4[%c0_6, %c0_7] : memref<128x128xbf16, #tpu.memory_space<vmem>>, vector<128x128xbf16>
    %c0_8 = arith.constant 0 : index
    %c0_9 = arith.constant 0 : index
    %10 = vector.load %arg5[%c0_8, %c0_9] : memref<1x128xf32, #tpu.memory_space<vmem>>, vector<1x128xf32>
    %cst_10 = arith.constant dense<0.000000e+00> : vector<16x128xf32>
    %11 = tpu.matmul %8, %9, %cst_10 {dimension_numbers = #tpu.dot_dimension_numbers<[1], [0], [0], [1], [0, 0, 1, 1], [], []>} : vector<16x128xbf16>, vector<128x128xbf16>, vector<16x128xf32> -> vector<16x128xf32>
    %12 = vector.broadcast %10 : vector<1x128xf32> to vector<16x128xf32>
    %13 = arith.addf %11, %12 : vector<16x128xf32>
    %cst_11 = arith.constant 0.000000e+00 : f32
    %14 = vector.broadcast %cst_11 : f32 to vector<16x128xf32>
    %15 = arith.maximumf %13, %14 : vector<16x128xf32>
    %16 = arith.truncf %15 : vector<16x128xf32> to vector<16x128xbf16>
    %c0_12 = arith.constant 0 : index
    %c0_13 = arith.constant 0 : index
    %17 = vector.load %arg6[%c0_12, %c0_13] : memref<128x128xbf16, #tpu.memory_space<vmem>>, vector<128x128xbf16>
    %c0_14 = arith.constant 0 : index
    %c0_15 = arith.constant 0 : index
    %18 = vector.load %arg7[%c0_14, %c0_15] : memref<1x128xf32, #tpu.memory_space<vmem>>, vector<1x128xf32>
    %cst_16 = arith.constant dense<0.000000e+00> : vector<16x128xf32>
    %19 = tpu.matmul %16, %17, %cst_16 {dimension_numbers = #tpu.dot_dimension_numbers<[1], [0], [0], [1], [0, 0, 1, 1], [], []>} : vector<16x128xbf16>, vector<128x128xbf16>, vector<16x128xf32> -> vector<16x128xf32>
    %20 = vector.broadcast %18 : vector<1x128xf32> to vector<16x128xf32>
    %21 = arith.addf %19, %20 : vector<16x128xf32>
    %c0_17 = arith.constant 0 : index
    %c0_18 = arith.constant 0 : index
    %22 = vector.load %arg8[%c0_17, %c0_18] : memref<16x128xf32, #tpu.memory_space<vmem>>, vector<16x128xf32>
    tpu.vector_store %arg8[%c0_17, %c0_18], %21 {strides = array<i32>} : memref<16x128xf32, #tpu.memory_space<vmem>>, vector<16x128xf32>,
    return
  }
  func.func @transform_0(%arg0: i32) -> (i32, i32) {
    %c0_i32 = arith.constant 0 : i32
    %c0_i32_0 = arith.constant 0 : i32
    return %arg0, %c0_i32 : i32, i32
  }
  func.func @transform_1(%arg0: i32) -> (i32, i32) {
    %c0_i32 = arith.constant 0 : i32
    %c0_i32_0 = arith.constant 0 : i32
    %c0_i32_1 = arith.constant 0 : i32
    return %c0_i32, %c0_i32_0 : i32, i32
  }
  func.func @transform_2(%arg0: i32) -> (i32, i32) {
    %c0_i32 = arith.constant 0 : i32
    %c0_i32_0 = arith.constant 0 : i32
    %c0_i32_1 = arith.constant 0 : i32
    return %c0_i32, %c0_i32_0 : i32, i32
  }
  func.func @transform_3(%arg0: i32) -> (i32, i32) {
    %c0_i32 = arith.constant 0 : i32
    %c0_i32_0 = arith.constant 0 : i32
    %c0_i32_1 = arith.constant 0 : i32
    return %c0_i32, %c0_i32_0 : i32, i32
  }
  func.func @transform_4(%arg0: i32) -> (i32, i32) {
    %c0_i32 = arith.constant 0 : i32
    %c0_i32_0 = arith.constant 0 : i32
    %c0_i32_1 = arith.constant 0 : i32
    return %c0_i32, %c0_i32_0 : i32, i32
  }
  func.func @transform_5(%arg0: i32) -> (i32, i32) {
    %c0_i32 = arith.constant 0 : i32
    %c0_i32_0 = arith.constant 0 : i32
    %c0_i32_1 = arith.constant 0 : i32
    return %c0_i32, %c0_i32_0 : i32, i32
  }
  func.func @transform_6(%arg0: i32) -> (i32, i32) {
    %c0_i32 = arith.constant 0 : i32
    %c0_i32_0 = arith.constant 0 : i32
    %c0_i32_1 = arith.constant 0 : i32
    return %c0_i32, %c0_i32_0 : i32, i32
  }
  func.func @transform_7(%arg0: i32) -> (i32, i32) {
    %c0_i32 = arith.constant 0 : i32
    %c0_i32_0 = arith.constant 0 : i32
    return %arg0, %c0_i32 : i32, i32
  }
}

</mosaic_0001>

<bundles_post_ra>
// kernel: masked_deep_ffn_forward.1
= control target key start
LH: loop header
LB: loop body
LE: loop exit
PB: predicated region body
PF: predicated region fallthrough
CT: control target
= control target key end

     0   :  { %12 = vsyncpa [#allocation3], 0  ;;  %s1367_s27 = smov [#allocation2]   ;;  %s1368_s29 = smov 64   ;;  %s1524_s0 = inlined_call_operand.vmem [shape: bf16[16,1024], index: 0, kind: input, shape index: {}]   ;;  %s1525_s1 = inlined_call_operand.hbm [shape: bf16[1024,128], index: 1, kind: input, shape index: {}]   ;;  %s1526_s2 = inlined_call_operand.vmem [shape: f32[1,128], index: 2, kind: input, shape index: {}]   ;;  %s1527_s3 = inlined_call_operand.vmem [shape: bf16[128,128], index: 3, kind: input, shape index: {}]   ;;  %s1528_s4 = inlined_call_operand.vmem [shape: f32[1,128], index: 4, kind: input, shape index: {}]   ;;  %s1529_s5 = inlined_call_operand.vmem [shape: bf16[128,128], index: 5, kind: input, shape index: {}]   ;;  %s1530_s6 = inlined_call_operand.vmem [shape: f32[1,128], index: 6, kind: input, shape index: {}]   ;;  %s1531_s7 = inlined_call_operand.vmem [shape: f32[16,128], index: 7, kind: output, shape index: {}]  }
   0x1   :  { %s19_s26 = sshll.u32 %s1525_s1, 4  ;;  %s21_s28 = sshll.u32 %s1367_s27, 4  ;;  %s20_s26 = int_to_ptr.hbm [resolvable:$true] %s19_s26  ;;  %s22_s28 = int_to_ptr.vmem [resolvable:$true] %s21_s28 }
   0x2   :  { %s1369_s30 = smov 4  }
   0x3   :  { %27 = dma.hbm_to_vmem [thread:$0]  %s20_s26, 8192, %s22_s28, [#allocation3], %s1368_s29, %s1368_s29, %s1369_s30  }
   0x4   :  { %1365 = dma.done.wait [#allocation3], 8192  }
   0x5   :  { %1366 = vsyncadd [#allocation3], 4294959104  ;;  %v1262_v0 = vld [vmem:[#allocation2 + $0x38] sm:$0xff]  ;;  %v1261_v4 = vld [vmem:[#allocation2 + $0x30] sm:$0xff] }
   0x6   :  { %v1270_v1 = vld [vmem:[#allocation2 + $0x78] sm:$0xff]  ;;  %606 = vmatpush.bf16.msra.mxu0 %v1262_v0  ;;  %v1269_v5 = vld [vmem:[#allocation2 + $0x70] sm:$0xff]  ;;  %v1260_v8 = vld [vmem:[#allocation2 + $0x28] sm:$0xff] }
   0x7   :  { %v1278_v2 = vld [vmem:[#allocation2 + $0xb8] sm:$0xff]  ;;  %620 = vmatpush.bf16.msra.mxu1 %v1270_v1  ;;  %v1277_v6 = vld [vmem:[#allocation2 + $0xb0] sm:$0xff]  ;;  %v1268_v9 = vld [vmem:[#allocation2 + $0x68] sm:$0xff] }
   0x8   :  { %v1286_v3 = vld [vmem:[#allocation2 + $0xf8] sm:$0xff]  ;;  %634 = vmatpush.bf16.msra.mxu2 %v1278_v2  ;;  %v1285_v7 = vld [vmem:[#allocation2 + $0xf0] sm:$0xff]  ;;  %v1276_v10 = vld [vmem:[#allocation2 + $0xa8] sm:$0xff] }
   0x9   :  { %648 = vmatpush.bf16.msra.mxu3 %v1286_v3  ;;  %v1284_v11 = vld [vmem:[#allocation2 + $0xe8] sm:$0xff]  ;;  %v1259_v12 = vld [vmem:[#allocation2 + $0x20] sm:$0xff]  ;;  %v1258_v16 = vld [vmem:[#allocation2 + $0x18] sm:$0xff] }
   0xa   :  { %607 = vmatpush.bf16.msra.mxu0 %v1261_v4  ;;  %v1267_v13 = vld [vmem:[#allocation2 + $0x60] sm:$0xff]  ;;  %v1266_v17 = vld [vmem:[#allocation2 + $0x58] sm:$0xff]  ;;  %v1257_v20 = vld [vmem:[#allocation2 + $0x10] sm:$0xff] }
   0xb   :  { %621 = vmatpush.bf16.msra.mxu1 %v1269_v5  ;;  %v1275_v14 = vld [vmem:[#allocation2 + $0xa0] sm:$0xff]  ;;  %v1274_v18 = vld [vmem:[#allocation2 + $0x98] sm:$0xff]  ;;  %v1265_v21 = vld [vmem:[#allocation2 + $0x50] sm:$0xff] }
   0xc   :  { %635 = vmatpush.bf16.msra.mxu2 %v1277_v6  ;;  %v1283_v15 = vld [vmem:[#allocation2 + $0xe0] sm:$0xff]  ;;  %v1282_v19 = vld [vmem:[#allocation2 + $0xd8] sm:$0xff]  ;;  %v1273_v22 = vld [vmem:[#allocation2 + $0x90] sm:$0xff] }
   0xd   :  { %649 = vmatpush.bf16.msra.mxu3 %v1285_v7  ;;  %v1281_v23 = vld [vmem:[#allocation2 + $0xd0] sm:$0xff]  ;;  %v1256_v24 = vld [vmem:[#allocation2 + $0x8] sm:$0xff]  ;;  %v1255_v28 = vld [vmem:[#allocation2] sm:$0xff] }
   0xe   :  { %608 = vmatpush.bf16.msra.mxu0 %v1260_v8  ;;  %v1264_v25 = vld [vmem:[#allocation2 + $0x48] sm:$0xff]  ;;  %v1263_v29 = vld [vmem:[#allocation2 + $0x40] sm:$0xff]  ;;  %v1294_v32 = vld [vmem:[#allocation2 + $0x138] sm:$0xff] }
   0xf   :  { %622 = vmatpush.bf16.msra.mxu1 %v1268_v9  ;;  %v1272_v26 = vld [vmem:[#allocation2 + $0x88] sm:$0xff]  ;;  %v1271_v30 = vld [vmem:[#allocation2 + $0x80] sm:$0xff]  ;;  %v1302_v33 = vld [vmem:[#allocation2 + $0x178] sm:$0xff] }
  0x10   :  { %636 = vmatpush.bf16.msra.mxu2 %v1276_v10  ;;  %v1280_v27 = vld [vmem:[#allocation2 + $0xc8] sm:$0xff]  ;;  %v1279_v31 = vld [vmem:[#allocation2 + $0xc0] sm:$0xff]  ;;  %v1310_v42 = vld [vmem:[#allocation2 + $0x1b8] sm:$0xff] }
  0x11   :  { %650 = vmatpush.bf16.msra.mxu3 %v1284_v11  ;;  %v905_v34 = vld [vmem:[%s1524_s0 + $0x8] sm:$0xf]  ;;  %v897_v36 = vld [vmem:[%s1524_s0] sm:$0xf]  ;;  %v1248_v38 = vld [vmem:[%s1524_s0 + $0xc] sm:$0xf] }
  0x12   :  { %609 = vmatpush.bf16.msra.mxu0 %v1259_v12  ;;  %v1252_v35 = vld [vmem:[%s1524_s0 + $0x24] sm:$0xf0]  ;;  %v1251_v37 = vld [vmem:[%s1524_s0 + $0x1c] sm:$0xf0]  ;;  %v907_v39 = vld [vmem:[%s1524_s0 + $0x28] sm:$0xf0] }
  0x13   :  { %623 = vmatpush.bf16.msra.mxu1 %v1267_v13  ;;  %v1247_v40 = vld [vmem:[%s1524_s0 + $0x4] sm:$0xf]  ;;  %v1318_v43 = vld [vmem:[#allocation2 + $0x1f8] sm:$0xff]  ;;  %v906_v44 = vor.u32 %v1252_v35, %v905_v34  ;;  %v898_v45 = vor.u32 %v1251_v37, %v897_v36  ;;  %v910_v46 = vor.u32 %v1248_v38, %v907_v39  ;;  %v1293_v48 = vld [vmem:[#allocation2 + $0x130] sm:$0xff] }
  0x14   :  { %637 = vmatpush.bf16.msra.mxu2 %v1275_v14  ;;  %v899_v41 = vld [vmem:[%s1524_s0 + $0x20] sm:$0xf0]  ;;  %v1301_v49 = vld [vmem:[#allocation2 + $0x170] sm:$0xff]  ;;  %v1292_v52 = vld [vmem:[#allocation2 + $0x128] sm:$0xff] }
  0x15   :  { %651 = vmatpush.bf16.msra.mxu3 %v1283_v15  ;;  %v902_v47 = vor.u32 %v1247_v40, %v899_v41  ;;  %v1309_v50 = vld [vmem:[#allocation2 + $0x1b0] sm:$0xff]  ;;  %v1300_v53 = vld [vmem:[#allocation2 + $0x168] sm:$0xff]  ;;  %v1291_v56 = vld [vmem:[#allocation2 + $0x120] sm:$0xff] }
  0x16   :  { %610 = vmatpush.bf16.msra.mxu0 %v1258_v16  ;;  %v1317_v51 = vld [vmem:[#allocation2 + $0x1f0] sm:$0xff]  ;;  %v1308_v54 = vld [vmem:[#allocation2 + $0x1a8] sm:$0xff]  ;;  %v1299_v57 = vld [vmem:[#allocation2 + $0x160] sm:$0xff] }
  0x17   :  { %624 = vmatpush.bf16.msra.mxu1 %v1266_v17  ;;  %v1316_v55 = vld [vmem:[#allocation2 + $0x1e8] sm:$0xff]  ;;  %v1307_v58 = vld [vmem:[#allocation2 + $0x1a0] sm:$0xff]  ;;  %v1290_v60 = vld [vmem:[#allocation2 + $0x118] sm:$0xff] }
  0x18   :  { %638 = vmatpush.bf16.msra.mxu2 %v1274_v18  ;;  %v1315_v59 = vld [vmem:[#allocation2 + $0x1e0] sm:$0xff]  ;;  %v1298_v61 = vld [vmem:[#allocation2 + $0x158] sm:$0xff]  ;;  %v1289_v0 = vld [vmem:[#allocation2 + $0x110] sm:$0xff] }
  0x19   :  { %652 = vmatpush.bf16.msra.mxu3 %v1282_v19  ;;  %v1306_v62 = vld [vmem:[#allocation2 + $0x198] sm:$0xff]  ;;  %v1297_v1 = vld [vmem:[#allocation2 + $0x150] sm:$0xff]  ;;  %v1288_v4 = vld [vmem:[#allocation2 + $0x108] sm:$0xff] }
  0x1a   :  { %611 = vmatpush.bf16.msra.mxu0 %v1257_v20  ;;  %v1314_v63 = vld [vmem:[#allocation2 + $0x1d8] sm:$0xff]  ;;  %v1305_v2 = vld [vmem:[#allocation2 + $0x190] sm:$0xff]  ;;  %v1296_v5 = vld [vmem:[#allocation2 + $0x148] sm:$0xff] }
  0x1b   :  { %625 = vmatpush.bf16.msra.mxu1 %v1265_v21  ;;  %v1313_v3 = vld [vmem:[#allocation2 + $0x1d0] sm:$0xff]  ;;  %v1304_v6 = vld [vmem:[#allocation2 + $0x188] sm:$0xff]  ;;  %v1287_v8 = vld [vmem:[#allocation2 + $0x100] sm:$0xff] }
  0x1c   :  { %639 = vmatpush.bf16.msra.mxu2 %v1273_v22  ;;  %v1312_v7 = vld [vmem:[#allocation2 + $0x1c8] sm:$0xff]  ;;  %v1295_v9 = vld [vmem:[#allocation2 + $0x140] sm:$0xff]  ;;  %v913_v12 = vld [vmem:[%s1524_s0 + $0x10] sm:$0xf] }
  0x1d   :  { %653 = vmatpush.bf16.msra.mxu3 %v1281_v23  ;;  %v1303_v10 = vld [vmem:[#allocation2 + $0x180] sm:$0xff]  ;;  %v1253_v13 = vld [vmem:[%s1524_s0 + $0x2c] sm:$0xf0]  ;;  %v1249_v14 = vld [vmem:[%s1524_s0 + $0x14] sm:$0xf] }
  0x1e   :  { %612 = vmatpush.bf16.msra.mxu0 %v1256_v24  ;;  %v1311_v11 = vld [vmem:[#allocation2 + $0x1c0] sm:$0xff]  ;;  %v915_v15 = vld [vmem:[%s1524_s0 + $0x30] sm:$0xf0]  ;;  %v921_v16 = vld [vmem:[%s1524_s0 + $0x18] sm:$0xf]  ;;  %v914_v20 = vor.u32 %v1253_v13, %v913_v12 }
  0x1f   :  { %626 = vmatpush.bf16.msra.mxu1 %v1264_v25  ;;  %v1254_v17 = vld [vmem:[%s1524_s0 + $0x34] sm:$0xf0]  ;;  %v1250_v18 = vld [vmem:[%s1524_s0 + $0x1c] sm:$0xf]  ;;  %v918_v21 = vor.u32 %v1249_v14, %v915_v15  ;;  %v1325_v25 = vld [vmem:[%s1527_s3 + $0x30] sm:$0xff] }
  0x20   :  { %640 = vmatpush.bf16.msra.mxu2 %v1272_v26  ;;  %v923_v19 = vld [vmem:[%s1524_s0 + $0x38] sm:$0xf0]  ;;  %v922_v22 = vor.u32 %v1254_v17, %v921_v16  ;;  %v1324_v26 = vld [vmem:[%s1527_s3 + $0x28] sm:$0xff]  ;;  %v1338_v34 = vld [vmem:[%s1526_s2] ss:$0 sm:$0xff] }
  0x21   :  { %654 = vmatpush.bf16.msra.mxu3 %v1280_v27  ;;  %v926_v23 = vor.u32 %v1250_v18, %v923_v19  ;;  %v1326_v24 = vld [vmem:[%s1527_s3 + $0x38] sm:$0xff]  ;;  %v1323_v27 = vld [vmem:[%s1527_s3 + $0x20] sm:$0xff]  ;;  %v1333_v40 = vld [vmem:[%s1529_s5 + $0x30] sm:$0xff] }
  0x22   :  { %613 = vmatpush.bf16.msra.mxu0 %v1255_v28  ;;  %v1322_v28 = vld [vmem:[%s1527_s3 + $0x18] sm:$0xff]  ;;  %v1339_v13 = vld [vmem:[%s1528_s4] ss:$0 sm:$0xff] }
  0x23   :  { %627 = vmatpush.bf16.msra.mxu1 %v1263_v29  ;;  %v1321_v29 = vld [vmem:[%s1527_s3 + $0x10] sm:$0xff]  ;;  %v1334_v39 = vld [vmem:[%s1529_s5 + $0x38] sm:$0xff] }
  0x24   :  { %641 = vmatpush.bf16.msra.mxu2 %v1271_v30 }
  0x25   :  { %655 = vmatpush.bf16.msra.mxu3 %v1279_v31  ;;  %614 = vmatmul.bf16.vlgmr.msra.gmra.mxu0 %v898_v45  ;;  %v1320_v31 = vld [vmem:[%s1527_s3 + $0x8] sm:$0xff] }
  0x26   :  { %662 = vmatpush.bf16.msrb.mxu0 %v1294_v32  ;;  %628 = vmatmul.bf16.vlgmr.msra.gmra.mxu1 %v902_v47 }
  0x27   :  { %676 = vmatpush.bf16.msrb.mxu1 %v1302_v33  ;;  %642 = vmatmul.bf16.vlgmr.msra.gmra.mxu2 %v906_v44  ;;  %v1319_v33 = vld [vmem:[%s1527_s3] sm:$0xff]  ;;  %v1332_v44 = vld [vmem:[%s1529_s5 + $0x28] sm:$0xff] }
  0x28   :  { %690 = vmatpush.bf16.msrb.mxu2 %v1310_v42  ;;  %656 = vmatmul.bf16.vlgmr.msra.gmra.mxu3 %v910_v46 }
  0x29   :  { %704 = vmatpush.bf16.msrb.mxu3 %v1318_v43 }
  0x2a   :  { %663 = vmatpush.bf16.msrb.mxu0 %v1293_v48 }
  0x2b   :  { %677 = vmatpush.bf16.msrb.mxu1 %v1301_v49 }
  0x2c   :  { %691 = vmatpush.bf16.msrb.mxu2 %v1309_v50  ;;  %v1331_v50 = vld [vmem:[%s1529_s5 + $0x20] sm:$0xff] }
  0x2d   :  { %705 = vmatpush.bf16.msrb.mxu3 %v1317_v51 }
  0x2e   :  { %664 = vmatpush.bf16.msrb.mxu0 %v1292_v52 }
  0x2f   :  { %678 = vmatpush.bf16.msrb.mxu1 %v1300_v53 }
  0x30   :  { %692 = vmatpush.bf16.msrb.mxu2 %v1308_v54 }
  0x31   :  { %706 = vmatpush.bf16.msrb.mxu3 %v1316_v55 }
  0x32   :  { %665 = vmatpush.bf16.msrb.mxu0 %v1291_v56 }
  0x33   :  { %679 = vmatpush.bf16.msrb.mxu1 %v1299_v57 }
  0x34   :  { %693 = vmatpush.bf16.msrb.mxu2 %v1307_v58 }
  0x35   :  { %707 = vmatpush.bf16.msrb.mxu3 %v1315_v59 }
  0x36   :  { %666 = vmatpush.bf16.msrb.mxu0 %v1290_v60 }
  0x37   :  { %680 = vmatpush.bf16.msrb.mxu1 %v1298_v61 }
  0x38   :  { %694 = vmatpush.bf16.msrb.mxu2 %v1306_v62 }
  0x39   :  { %708 = vmatpush.bf16.msrb.mxu3 %v1314_v63 }
  0x3a   :  { %667 = vmatpush.bf16.msrb.mxu0 %v1289_v0 }
  0x3b   :  { %681 = vmatpush.bf16.msrb.mxu1 %v1297_v1 }
  0x3c   :  { %695 = vmatpush.bf16.msrb.mxu2 %v1305_v2 }
  0x3d   :  { %709 = vmatpush.bf16.msrb.mxu3 %v1313_v3 }
  0x3e   :  { %668 = vmatpush.bf16.msrb.mxu0 %v1288_v4 }
  0x3f   :  { %682 = vmatpush.bf16.msrb.mxu1 %v1296_v5 }
  0x40   :  { %696 = vmatpush.bf16.msrb.mxu2 %v1304_v6 }
  0x41   :  { %710 = vmatpush.bf16.msrb.mxu3 %v1312_v7 }
  0x42   :  { %669 = vmatpush.bf16.msrb.mxu0 %v1287_v8  ;;  %v1330_v8 = vld [vmem:[%s1529_s5 + $0x18] sm:$0xff] }
  0x43   :  { %683 = vmatpush.bf16.msrb.mxu1 %v1295_v9  ;;  %v1329_v9 = vld [vmem:[%s1529_s5 + $0x10] sm:$0xff] }
  0x44   :  { %697 = vmatpush.bf16.msrb.mxu2 %v1303_v10  ;;  %v1328_v10 = vld [vmem:[%s1529_s5 + $0x8] sm:$0xff] }
  0x45   :  { %711 = vmatpush.bf16.msrb.mxu3 %v1311_v11  ;;  %670 = vmatmul.bf16.vlgmr.msrb.gmra.mxu0 %v914_v20  ;;  %v1327_v11 = vld [vmem:[%s1529_s5] sm:$0xff] }
  0x46   :  { %684 = vmatmul.bf16.vlgmr.msrb.gmra.mxu1 %v918_v21  ;;  %789 = vmatpush.bf16.msra.mxu0 %v1326_v24  ;;  %v1340_v20 = vld [vmem:[%s1530_s6] ss:$0 sm:$0xff] }
  0x47   :  { %698 = vmatmul.bf16.vlgmr.msrb.gmra.mxu2 %v922_v22  ;;  %874 = vmatpush.bf16.msra.mxu1 %v1334_v39 }
  0x48   :  { %712 = vmatmul.bf16.vlgmr.msrb.gmra.mxu3 %v926_v23 }
  0x4a   :  { %790 = vmatpush.bf16.msra.mxu0 %v1325_v25 }
  0x4b   :  { %875 = vmatpush.bf16.msra.mxu1 %v1333_v40 }
  0x4e   :  { %791 = vmatpush.bf16.msra.mxu0 %v1324_v26 }
  0x4f   :  { %876 = vmatpush.bf16.msra.mxu1 %v1332_v44 }
  0x52   :  { %792 = vmatpush.bf16.msra.mxu0 %v1323_v27 }
  0x53   :  { %877 = vmatpush.bf16.msra.mxu1 %v1331_v50 }
  0x56   :  { %793 = vmatpush.bf16.msra.mxu0 %v1322_v28 }
  0x57   :  { %878 = vmatpush.bf16.msra.mxu1 %v1330_v8 }
  0x5a   :  { %794 = vmatpush.bf16.msra.mxu0 %v1321_v29 }
  0x5b   :  { %879 = vmatpush.bf16.msra.mxu1 %v1329_v9 }
  0x5e   :  { %795 = vmatpush.bf16.msra.mxu0 %v1320_v31 }
  0x5f   :  { %880 = vmatpush.bf16.msra.mxu1 %v1328_v10 }
  0x62   :  { %796 = vmatpush.bf16.msra.mxu0 %v1319_v33 }
  0x63   :  { %881 = vmatpush.bf16.msra.mxu1 %v1327_v11 }
  0xa2   :  { %v615_v30 = vpop.f32.mrf.mxu0 }
  0xa3   :  { %v629_v32 = vpop.f32.mrf.mxu1  ;;  %v616_v37 = vadd.f32 %v1338_v34, %v615_v30 }
  0xa5   :  { %v630_v42 = vadd.f32 %v629_v32, %v616_v37 }
  0xaa   :  { %v643_v35 = vpop.f32.mrf.mxu2  ;;  %v617_v38 = vpop.f32.mrf.mxu0 }
  0xab   :  { %v657_v36 = vpop.f32.mrf.mxu3  ;;  %v631_v41 = vpop.f32.mrf.mxu1  ;;  %v618_v43 = vadd.f32 %v1338_v34, %v617_v38  ;;  %v644_v47 = vadd.f32 %v643_v35, %v630_v42 }
  0xad   :  { %v632_v48 = vadd.f32 %v631_v41, %v618_v43  ;;  %v658_v52 = vadd.f32 %v657_v36, %v644_v47 }
  0xb2   :  { %v645_v45 = vpop.f32.mrf.mxu2 }
  0xb3   :  { %v659_v46 = vpop.f32.mrf.mxu3  ;;  %v646_v53 = vadd.f32 %v645_v45, %v632_v48 }
  0xb5   :  { %v660_v57 = vadd.f32 %v659_v46, %v646_v53 }
  0xc2   :  { %v671_v49 = vpop.f32.mrf.mxu0 }
  0xc3   :  { %v685_v51 = vpop.f32.mrf.mxu1  ;;  %v672_v54 = vadd.f32 %v671_v49, %v658_v52 }
  0xc5   :  { %v686_v59 = vadd.f32 %v685_v51, %v672_v54 }
  0xca   :  { %v699_v55 = vpop.f32.mrf.mxu2  ;;  %v673_v58 = vpop.f32.mrf.mxu0 }
  0xcb   :  { %v713_v56 = vpop.f32.mrf.mxu3  ;;  %v674_v60 = vadd.f32 %v673_v58, %v660_v57  ;;  %v700_v61 = vadd.f32 %v699_v55, %v686_v59  ;;  %v687_v62 = vpop.f32.mrf.mxu1 }
  0xcd   :  { %v688_v63 = vadd.f32 %v687_v62, %v674_v60  ;;  %v714_v1 = vadd.f32 %v713_v56, %v700_v61 }
  0xcf   :  { %v718_v5 = vmax.f32 %v714_v1, 0.0 }
  0xd2   :  { %v701_v0 = vpop.f32.mrf.mxu2 }
  0xd3   :  { %v702_v2 = vadd.f32 %v701_v0, %v688_v63  ;;  %v715_v3 = vpop.f32.mrf.mxu3 }
  0xd5   :  { %v716_v4 = vadd.f32 %v715_v3, %v702_v2 }
  0xd7   :  { %v719_v6 = vmax.f32 %v716_v4, 0.0 }
  0xd9   :  { %v720_v7 = vpack.c.bf16 %v719_v6, %v718_v5 }
  0xdb   :  { %797 = vmatmul.bf16.vlgmr.msra.gmra.mxu0 %v720_v7 }
 0x158   :  { %v798_v12 = vpop.f32.mrf.mxu0 }
 0x159   :  { %v799_v14 = vadd.f32 %v1339_v13, %v798_v12 }
 0x15b   :  { %v803_v17 = vmax.f32 %v799_v14, 0.0 }
 0x160   :  { %v800_v15 = vpop.f32.mrf.mxu0 }
 0x161   :  { %v801_v16 = vadd.f32 %v1339_v13, %v800_v15 }
 0x163   :  { %v804_v18 = vmax.f32 %v801_v16, 0.0 }
 0x165   :  { %v805_v19 = vpack.c.bf16 %v804_v18, %v803_v17 }
 0x167   :  { %882 = vmatmul.bf16.vlgmr.msra.gmra.mxu1 %v805_v19 }
 0x1e4   :  { %v883_v21 = vpop.f32.mrf.mxu1 }
 0x1e5   :  { %v884_v22 = vadd.f32 %v1340_v20, %v883_v21 }
 0x1e7   :  { %888 = vst [vmem:[%s1531_s7] sm:$0xff] %v884_v22 }
 0x1ec   :  { %v885_v23 = vpop.f32.mrf.mxu1 }
 0x1ed   :  { %v886_v24 = vadd.f32 %v1340_v20, %v885_v23 }
 0x1ef   :  { %889 = vst [vmem:[%s1531_s7 + $0x8] sm:$0xff] %v886_v24 }
 0x1f0   :  { %894 = vsyncpa [#allocation3], 1 }

</bundles_post_ra>
